<compile_context>
chip_gen: v6e
topology: v6e:2x2x1
jax: 0.10.0
libtpu: 0.0.40
codegen_flags: <defaults>
</compile_context>

<pallas_src>
import functools

import jax
import jax.numpy as jnp
from jax.experimental import pallas as pl
from jax.experimental.pallas import tpu as pltpu


def _critic_kernel(state_ref, action_ref, w1s_ref, w1a_ref, b1_ref,
                   w2_ref, b2_ref, o_ref):
    # state: [tm, S], action: [tm, A], w1s: [S, H], w1a: [A, H]
    # b1: [1, H], w2: [1, H] (row form), b2: [1, 1], o: [tm, 1]
    h = jnp.dot(state_ref[...], w1s_ref[...],
                preferred_element_type=jnp.float32)
    h = h + jnp.dot(action_ref[...], w1a_ref[...],
                    preferred_element_type=jnp.float32)
    h = jnp.maximum(h + b1_ref[...].astype(jnp.float32), 0.0)   # bias + ReLU in f32

    # linear2 (H -> 1) on VPU + XLU lane reduction instead of a 1-lane matmul.
    out = jnp.sum(h * w2_ref[...].astype(jnp.float32), axis=-1, keepdims=True)
    out = out + b2_ref[...].astype(jnp.float32)
    o_ref[...] = out.astype(o_ref.dtype)


@functools.partial(jax.jit, static_argnames=("block_b", "compute_dtype"))
def ddpg_critic1_forward(state, action, params, *, block_b=512,
                         compute_dtype=None):
    """Pallas implementation of DDPG_Critic1.forward(state, action).

    params: dict with
      w1_state [S, H], w1_action [A, H], b1 [1, H], w2_row [1, H], b2 [1, 1]
    compute_dtype: optional dtype (e.g. jnp.bfloat16) for the matmul operands;
      accumulation / bias / relu / reduction always happen in float32.
    """
    w1s, w1a = params["w1_state"], params["w1_action"]
    b1, w2_row, b2 = params["b1"], params["w2_row"], params["b2"]

    B, S = state.shape
    _, A = action.shape
    H = w1s.shape[1]
    O = b2.shape[1]

    if compute_dtype is not None:
        state = state.astype(compute_dtype)
        action = action.astype(compute_dtype)
        w1s = w1s.astype(compute_dtype)
        w1a = w1a.astype(compute_dtype)

    # Batch tile: full batch if it fits one block, otherwise block_b rows
    # (multiple of 8); the trailing partial block is masked by Pallas.
    tm = B if B <= block_b else block_b
    grid = (pl.cdiv(B, tm),)

    blocked = lambda cols: pl.BlockSpec((tm, cols), lambda i: (i, 0))
    resident = lambda r, c: pl.BlockSpec((r, c), lambda i: (0, 0))

    return pl.pallas_call(
        _critic_kernel,
        out_shape=jax.ShapeDtypeStruct((B, O), jnp.float32),
        grid=grid,
        in_specs=[
            blocked(S),            # state  [tm, S]
            blocked(A),            # action [tm, A]
            resident(S, H),        # w1_state  (VMEM-resident across grid)
            resident(A, H),        # w1_action
            resident(1, H),        # b1
            resident(1, H),        # w2 row
            resident(1, O),        # b2
        ],
        out_specs=blocked(O),      # out [tm, 1]
        compiler_params=pltpu.CompilerParams(
            dimension_semantics=("parallel",),
        ),
    )(state, action, w1s, w1a, b1, w2_row, b2)


def init_params(key, state_dim, action_dim, hidden_size1, output_size=1):
    """nn.Linear-style init U(-1/sqrt(fan_in), +1/sqrt(fan_in)); weights stored
    pre-split (state/action) and pre-transposed for the kernel layout."""
    input_size = state_dim + action_dim
    k1, k2, k3, k4 = jax.random.split(key, 4)
    bound1 = 1.0 / jnp.sqrt(jnp.float32(input_size))
    bound2 = 1.0 / jnp.sqrt(jnp.float32(hidden_size1))

    w1 = jax.random.uniform(k1, (input_size, hidden_size1), jnp.float32,
                            -bound1, bound1)
    b1 = jax.random.uniform(k2, (1, hidden_size1), jnp.float32,
                            -bound1, bound1)
    w2 = jax.random.uniform(k3, (hidden_size1, output_size), jnp.float32,
                            -bound2, bound2)
    b2 = jax.random.uniform(k4, (1, output_size), jnp.float32,
                            -bound2, bound2)
    return {
        "w1_state": w1[:state_dim, :],          # [S, H]
        "w1_action": w1[state_dim:, :],         # [A, H]
        "b1": b1,                               # [1, H]
        "w2_row": jnp.transpose(w2),            # [1, H]  (O == 1)
        "b2": b2,                               # [1, 1]
    }


if __name__ == "__main__":
    # Small shapes consistent with the module.
    batch = 2
    state_dim = 12
    action_dim = 4
    hidden_size1 = 32
    output_size = 1

    key = jax.random.PRNGKey(0)
    kp, ks, ka = jax.random.split(key, 3)

    params = init_params(kp, state_dim, action_dim, hidden_size1, output_size)
    state = jax.random.normal(ks, (batch, state_dim), jnp.float32)
    action = jax.random.normal(ka, (batch, action_dim), jnp.float32)

    out = ddpg_critic1_forward(state, action, params)
    out = jax.block_until_ready(out)

    # Pure-JAX reference (original cat + two-linear formulation).
    x = jnp.concatenate([state, action], axis=1)
    w1_full = jnp.concatenate([params["w1_state"], params["w1_action"]], axis=0)
    h_ref = jnp.maximum(x @ w1_full + params["b1"], 0.0)
    ref = h_ref @ jnp.transpose(params["w2_row"]) + params["b2"]

    assert out.shape == (batch, output_size)
    assert jnp.allclose(out, ref, atol=1e-5, rtol=1e-5), (out, ref)

    # Also exercise the batched/tiled path (grid > 1 step, partial last block).
    big_b = 1000
    kbs, kba = jax.random.split(jax.random.PRNGKey(1))
    big_state = jax.random.normal(kbs, (big_b, state_dim), jnp.float32)
    big_action = jax.random.normal(kba, (big_b, action_dim), jnp.float32)
    big_out = jax.block_until_ready(
        ddpg_critic1_forward(big_state, big_action, params, block_b=512))
    big_x = jnp.concatenate([big_state, big_action], axis=1)
    big_ref = (jnp.maximum(big_x @ w1_full + params["b1"], 0.0)
               @ jnp.transpose(params["w2_row"]) + params["b2"])
    assert big_out.shape == (big_b, output_size)
    assert jnp.allclose(big_out, big_ref, atol=1e-4, rtol=1e-4)

    print("KERNEL_OK")
</pallas_src>

<mosaic_0001>
module attributes {stable_mosaic.version = 11 : i64} {
  func.func @_critic_kernel(%arg0: i32, %arg1: memref<2x12xf32, #tpu.memory_space<vmem>>, %arg2: memref<2x4xf32, #tpu.memory_space<vmem>>, %arg3: memref<12x32xf32, #tpu.memory_space<vmem>>, %arg4: memref<4x32xf32, #tpu.memory_space<vmem>>, %arg5: memref<1x32xf32, #tpu.memory_space<vmem>>, %arg6: memref<1x32xf32, #tpu.memory_space<vmem>>, %arg7: memref<1x1xf32, #tpu.memory_space<vmem>>, %arg8: memref<2x1xf32, #tpu.memory_space<vmem>>) attributes {dimension_semantics = [#tpu.dimension_semantics<parallel>], iteration_bounds = array<i64: 1>, scalar_prefetch = 0 : i64, scratch_operands = 0 : i64, tpu.core_type = #tpu.core_type<tc>, window_params = [{transform_indices = @transform_0, window_bounds = array<i64: 2, 12>}, {transform_indices = @transform_1, window_bounds = array<i64: 2, 4>}, {pipeline_mode = #tpu.pipeline_mode<synchronous>, transform_indices = @transform_2, window_bounds = array<i64: 12, 32>}, {pipeline_mode = #tpu.pipeline_mode<synchronous>, transform_indices = @transform_3, window_bounds = array<i64: 4, 32>}, {pipeline_mode = #tpu.pipeline_mode<synchronous>, transform_indices = @transform_4, window_bounds = array<i64: 1, 32>}, {pipeline_mode = #tpu.pipeline_mode<synchronous>, transform_indices = @transform_5, window_bounds = array<i64: 1, 32>}, {pipeline_mode = #tpu.pipeline_mode<synchronous>, transform_indices = @transform_6, window_bounds = array<i64: 1, 1>}, {transform_indices = @transform_7, window_bounds = array<i64: 2, 1>}]} {
    %c0 = arith.constant 0 : index
    %c0_0 = arith.constant 0 : index
    %0 = vector.load %arg1[%c0, %c0_0] : memref<2x12xf32, #tpu.memory_space<vmem>>, vector<2x12xf32>
    %c0_1 = arith.constant 0 : index
    %c0_2 = arith.constant 0 : index
    %1 = vector.load %arg3[%c0_1, %c0_2] : memref<12x32xf32, #tpu.memory_space<vmem>>, vector<12x32xf32>
    %cst = arith.constant dense<0.000000e+00> : vector<2x32xf32>
    %2 = tpu.matmul %0, %1, %cst {dimension_numbers = #tpu.dot_dimension_numbers<[1], [0], [0], [1], [0, 0, 1, 1], [], []>} : vector<2x12xf32>, vector<12x32xf32>, vector<2x32xf32> -> vector<2x32xf32>
    %c0_3 = arith.constant 0 : index
    %c0_4 = arith.constant 0 : index
    %3 = vector.load %arg2[%c0_3, %c0_4] : memref<2x4xf32, #tpu.memory_space<vmem>>, vector<2x4xf32>
    %c0_5 = arith.constant 0 : index
    %c0_6 = arith.constant 0 : index
    %4 = vector.load %arg4[%c0_5, %c0_6] : memref<4x32xf32, #tpu.memory_space<vmem>>, vector<4x32xf32>
    %cst_7 = arith.constant dense<0.000000e+00> : vector<2x32xf32>
    %5 = tpu.matmul %3, %4, %cst_7 {dimension_numbers = #tpu.dot_dimension_numbers<[1], [0], [0], [1], [0, 0, 1, 1], [], []>} : vector<2x4xf32>, vector<4x32xf32>, vector<2x32xf32> -> vector<2x32xf32>
    %6 = arith.addf %2, %5 : vector<2x32xf32>
    %c0_8 = arith.constant 0 : index
    %c0_9 = arith.constant 0 : index
    %7 = vector.load %arg5[%c0_8, %c0_9] : memref<1x32xf32, #tpu.memory_space<vmem>>, vector<1x32xf32>
    %8 = vector.broadcast %7 : vector<1x32xf32> to vector<2x32xf32>
    %9 = arith.addf %6, %8 : vector<2x32xf32>
    %cst_10 = arith.constant 0.000000e+00 : f32
    %10 = vector.broadcast %cst_10 : f32 to vector<2x32xf32>
    %11 = arith.maximumf %9, %10 : vector<2x32xf32>
    %c0_11 = arith.constant 0 : index
    %c0_12 = arith.constant 0 : index
    %12 = vector.load %arg6[%c0_11, %c0_12] : memref<1x32xf32, #tpu.memory_space<vmem>>, vector<1x32xf32>
    %13 = vector.broadcast %12 : vector<1x32xf32> to vector<2x32xf32>
    %14 = arith.mulf %11, %13 : vector<2x32xf32>
    %cst_13 = arith.constant dense<0.000000e+00> : vector<2xf32>
    %15 = vector.multi_reduction <add>, %14, %cst_13 [1] : vector<2x32xf32> to vector<2xf32>
    %16 = vector.shape_cast %15 : vector<2xf32> to vector<2x1xf32>
    %c0_14 = arith.constant 0 : index
    %c0_15 = arith.constant 0 : index
    %17 = vector.load %arg7[%c0_14, %c0_15] : memref<1x1xf32, #tpu.memory_space<vmem>>, vector<1x1xf32>
    %18 = vector.broadcast %17 : vector<1x1xf32> to vector<2x1xf32>
    %19 = arith.addf %16, %18 : vector<2x1xf32>
    %c0_16 = arith.constant 0 : index
    %c0_17 = arith.constant 0 : index
    %20 = vector.load %arg8[%c0_16, %c0_17] : memref<2x1xf32, #tpu.memory_space<vmem>>, vector<2x1xf32>
    tpu.vector_store %arg8[%c0_16, %c0_17], %19 {strides = array<i32>} : memref<2x1xf32, #tpu.memory_space<vmem>>, vector<2x1xf32>,
    return
  }
  func.func @transform_0(%arg0: i32) -> (i32, i32) {
    %c0_i32 = arith.constant 0 : i32
    %c0_i32_0 = arith.constant 0 : i32
    return %arg0, %c0_i32 : i32, i32
  }
  func.func @transform_1(%arg0: i32) -> (i32, i32) {
    %c0_i32 = arith.constant 0 : i32
    %c0_i32_0 = arith.constant 0 : i32
    return %arg0, %c0_i32 : i32, i32
  }
  func.func @transform_2(%arg0: i32) -> (i32, i32) {
    %c0_i32 = arith.constant 0 : i32
    %c0_i32_0 = arith.constant 0 : i32
    %c0_i32_1 = arith.constant 0 : i32
    return %c0_i32, %c0_i32_0 : i32, i32
  }
  func.func @transform_3(%arg0: i32) -> (i32, i32) {
    %c0_i32 = arith.constant 0 : i32
    %c0_i32_0 = arith.constant 0 : i32
    %c0_i32_1 = arith.constant 0 : i32
    return %c0_i32, %c0_i32_0 : i32, i32
  }
  func.func @transform_4(%arg0: i32) -> (i32, i32) {
    %c0_i32 = arith.constant 0 : i32
    %c0_i32_0 = arith.constant 0 : i32
    %c0_i32_1 = arith.constant 0 : i32
    return %c0_i32, %c0_i32_0 : i32, i32
  }
  func.func @transform_5(%arg0: i32) -> (i32, i32) {
    %c0_i32 = arith.constant 0 : i32
    %c0_i32_0 = arith.constant 0 : i32
    %c0_i32_1 = arith.constant 0 : i32
    return %c0_i32, %c0_i32_0 : i32, i32
  }
  func.func @transform_6(%arg0: i32) -> (i32, i32) {
    %c0_i32 = arith.constant 0 : i32
    %c0_i32_0 = arith.constant 0 : i32
    %c0_i32_1 = arith.constant 0 : i32
    return %c0_i32, %c0_i32_0 : i32, i32
  }
  func.func @transform_7(%arg0: i32) -> (i32, i32) {
    %c0_i32 = arith.constant 0 : i32
    %c0_i32_0 = arith.constant 0 : i32
    return %arg0, %c0_i32 : i32, i32
  }
}

</mosaic_0001>

<bundles_post_ra>
// kernel: ddpg_critic1_forward.1
= control target key start
LH: loop header
LB: loop body
LE: loop exit
PB: predicated region body
PF: predicated region fallthrough
CT: control target
= control target key end

     0   :  { %s395_s0 = inlined_call_operand.vmem [shape: f32[2,12], index: 0, kind: input, shape index: {}]   ;;  %s396_s1 = inlined_call_operand.hbm [shape: f32[2,4], index: 1, kind: input, shape index: {}]   ;;  %s397_s2 = inlined_call_operand.hbm [shape: f32[12,32], index: 2, kind: input, shape index: {}]   ;;  %s398_s3 = inlined_call_operand.vmem [shape: f32[4,32], index: 3, kind: input, shape index: {}]   ;;  %s399_s4 = inlined_call_operand.vmem [shape: f32[1,32], index: 4, kind: input, shape index: {}]   ;;  %s400_s5 = inlined_call_operand.vmem [shape: f32[1,32], index: 5, kind: input, shape index: {}]   ;;  %s401_s6 = inlined_call_operand.<no memory space> [shape: f32[1,1], index: 6, kind: input, shape index: {}]   ;;  %s402_s7 = inlined_call_operand.vmem [shape: f32[2,1], index: 7, kind: output, shape index: {}]  }
   0x1   :  { %v12_v0 = vstv %s401_s6 }
   0x2   :  { %13 = vst [vmem:[#allocation2] sm:$0x1] %v12_v0 }
   0x3   :  { %14 = vsyncpa [#allocation4], 0 }
   0x4   :  { %15 = vsyncpa [#allocation6], 0  ;;  %s325_s26 = smov [#allocation3]   ;;  %s326_s28 = smov [#allocation5]  }
   0x5   :  { %s24_s27 = sshll.u32 %s325_s26, 4  ;;  %s33_s29 = sshll.u32 %s326_s28, 4  ;;  %s25_s27 = int_to_ptr.vmem [resolvable:$true] %s24_s27  ;;  %s34_s29 = int_to_ptr.vmem [resolvable:$true] %s33_s29 }
   0x6   :  { %s289_s30 = scalar_lea.vmem %s25_s27, 32  ;;  %p294_p1 = scmp.lt.s32.totalorder %s25_s27, %s25_s27 }
   0x7   :  { %p290_p0 = scmp.ne.s32.totalorder %s25_s27, %s289_s30  ;;  %p295_p2 = scmp.lt.s32.totalorder %s289_s30, %s289_s30 }
   0x9   :  { %p296_p3 = por %p295_p2, %p294_p1 }
   0xb   :  { %p297_p4 = pnand %p296_p3, %p290_p0 }
   0xd   :  { %300 = shalt.err (!%p297_p4)
}
   0xe   :  { %27 = dma.hbm_to_vmem [thread:$0]  %s396_s1, 32, %s25_s27, [#allocation4]  }
   0xf   :  { %s309_s6 = scalar_lea.vmem %s34_s29, 256  ;;  %p314_p6 = scmp.lt.s32.totalorder %s34_s29, %s34_s29 }
  0x10   :  { %p310_p5 = scmp.ne.s32.totalorder %s34_s29, %s309_s6  ;;  %p315_p7 = scmp.lt.s32.totalorder %s309_s6, %s309_s6 }
  0x12   :  { %p316_p8 = por %p315_p7, %p314_p6 }
  0x14   :  { %p317_p9 = pnand %p316_p8, %p310_p5 }
  0x16   :  { %320 = shalt.err (!%p317_p9)
}
  0x17   :  { %s327_s10 = smov 128   ;;  %s328_s11 = smov 8  }
  0x18   :  { %39 = dma.hbm_to_vmem [thread:$0]  %s397_s2, 256, %s34_s29, [#allocation6], %s327_s10, %s327_s10, %s328_s11  }
  0x19   :  { %321 = dma.done.wait [#allocation4], 32  }
  0x1a   :  { %322 = vsyncadd [#allocation4], 4294967264 }
  0x1b   :  { %323 = dma.done.wait [#allocation6], 256  }
  0x1c   :  { %324 = vsyncadd [#allocation6], 4294967040  ;;  %v329_v1 = vmov 0.0   ;;  %vm330_vm0 = vmmov 0   ;;  %vm63_vm1 = vcmask 1043456   ;;  %vm59_vm2 = vcmask 31744  }
  0x1d   :  { %263 = vmatprep.subr.mxu0 %v329_v1  ;;  %268 = vmatprep.subr.mxu1 %v329_v1  ;;  %v58_v2 = vld [vmem:[%s398_s3] sm:$0xf]  ;;  %v56_v3 = vld [vmem:[#allocation5 + $0x8] sm:$0xf]  ;;  %vm137_vm3 = vcmask 97280   ;;  %vm231_vm4 = vcmask 254976  }
  0x1e   :  { %265 = vmatprep.mubr.msk.f32.mxu0 %vm330_vm0, %v329_v1  ;;  %272 = vmatprep.mubr.msk.f32.mxu1 %vm330_vm0, %v329_v1  ;;  %v57_v4 = vld [vmem:[#allocation3] sm:$0x3]  ;;  %v55_v5 = vld [vmem:[#allocation5] sm:$0xff]  ;;  %v255_v10 = vld [vmem:[%s399_s4] ss:$0 sm:$0xff]  ;;  %vm243_vm5 = vcmask 1024  }
  0x1f   :  { %264 = vmatpush3.msk.msra.mxu0 %vm63_vm1, %v58_v2  ;;  %269 = vmatpush3.msk.msra.mxu1 %vm63_vm1, %v56_v3  ;;  %v54_v6 = vld [vmem:[%s395_s0] sm:$0x3] }
  0x20   :  { %266 = vmatmul.mubr.msk.f32.vlgmr.msra.gmra.mxu0 %vm59_vm2, %v57_v4  ;;  %270 = vmatprep.subr.mxu1 %v329_v1  ;;  %v256_v14 = vld [vmem:[%s400_s5] ss:$0 sm:$0xff] }
  0x21   :  { %271 = vmatpush3.msra.mxu1 %v55_v5  ;;  %v257_v18 = vld [vmem:[#allocation2] ss:$0 sm:$0xff] }
  0x22   :  { %273 = vmatmul.mubr.msk.f32.vlgmr.msra.gmra.mxu1 %vm137_vm3, %v54_v6 }
  0xe0   :  { %v133_v7 = vpop.f32.mrf.mxu0 }
  0xe2   :  { %v267_v8 = vpop.f32.mrf.mxu0  ;;  %v210_v9 = vpop.f32.mrf.mxu1 }
  0xe3   :  { %v211_v11 = vadd.f32 %v210_v9, %v133_v7 }
  0xe4   :  { %v274_v12 = vpop.f32.mrf.mxu1 }
  0xe5   :  { %v221_v13 = vadd.f32 %v255_v10, %v211_v11 }
  0xe7   :  { %v222_v15 = vmax.f32 %v221_v13, 0.0 }
  0xe9   :  { %v230_v16 = vmul.f32 %v256_v14, %v222_v15 }
  0xeb   :  { %v232_v17 = vsel %vm231_vm4, %v230_v16, 0.0 }
  0xec   :  { %233 = vadd.xlane.f32.xlu0 %v232_v17 }
 0x175   :  { %v234_v19 = vpop.xlane.xlu0 %233 }
 0x176   :  { %v242_v20 = vadd.f32 %v257_v18, %v234_v19 }
 0x178   :  { %244 = vst.msk [vmem:[%s402_s7] sm:$0x3] %vm243_vm5, %v242_v20 }
 0x179   :  { %249 = vsyncpa [#allocation4], 1 }
 0x17a   :  { %250 = vsyncpa [#allocation6], 1 }

</bundles_post_ra>
